<compile_context>
chip_gen: v7x
topology: tpu7x:2x2x1
jax: 0.10.0
libtpu: 0.0.40
codegen_flags: <defaults>
</compile_context>

<pallas_src>
import functools

import jax
import jax.numpy as jnp
from jax.experimental import pallas as pl
from jax.experimental.pallas import tpu as pltpu


def _round_up(x: int, m: int) -> int:
    return ((x + m - 1) // m) * m


def _cdiv(a: int, b: int) -> int:
    return -(-a // b)


# ----------------------------------------------------------------------------
# Gaussian taps (mirrors torchvision _get_gaussian_kernel1d)
# ----------------------------------------------------------------------------
def _gaussian_kernel1d(kernel_size: int, sigma) -> jnp.ndarray:
    ksize_half = (kernel_size - 1) * 0.5
    x = jnp.linspace(-ksize_half, ksize_half, kernel_size, dtype=jnp.float32)
    pdf = jnp.exp(-0.5 * jnp.square(x / sigma))
    return pdf / jnp.sum(pdf)


# ----------------------------------------------------------------------------
# Banded blur matrices: reflect padding + 1-D taps as matmul operands
# ----------------------------------------------------------------------------
def _reflect_index(idx, n: int):
    # torch 'reflect' (no edge repeat): -1 -> 1, n -> n-2.  Requires pad < n.
    idx = jnp.where(idx < 0, -idx, idx)
    idx = jnp.where(idx > n - 1, 2 * (n - 1) - idx, idx)
    return idx


def _blur_matrices(kx, ky, H, W, Hp, Wp):
    """vmat: (Hp, H) vertical taps+reflect; hmat: (W, Wp) horizontal taps+reflect.

    Rows/cols beyond H / W (the lane/sublane padding) are don't-care: the
    padded output region is cropped in the wrapper.  kx/ky stay traced.
    """
    kh, kw = int(ky.shape[0]), int(kx.shape[0])
    ph, pw = kh // 2, kw // 2

    # Vertical pass:  out[i, :] = sum_j vmat[i, j] * x[j, :]
    i_out = jnp.arange(Hp, dtype=jnp.int32)[:, None]
    j_in = jnp.arange(H, dtype=jnp.int32)[None, :]
    vmat = jnp.zeros((Hp, H), jnp.float32)
    for dy in range(kh):
        src = _reflect_index(i_out - ph + dy, H)
        vmat = vmat + ky[dy] * (src == j_in).astype(jnp.float32)

    # Horizontal pass:  out[:, j] = sum_i x[:, i] * hmat[i, j]
    i_in = jnp.arange(W, dtype=jnp.int32)[:, None]
    j_out = jnp.arange(Wp, dtype=jnp.int32)[None, :]
    hmat = jnp.zeros((W, Wp), jnp.float32)
    for dx in range(kw):
        src = _reflect_index(j_out - pw + dx, W)
        hmat = hmat + kx[dx] * (src == i_in).astype(jnp.float32)

    return vmat, hmat


# ----------------------------------------------------------------------------
# Pallas kernel: two MXU matmuls per plane (horizontal then vertical)
# ----------------------------------------------------------------------------
def _blur_kernel(vmat_ref, hmat_ref, x_ref, o_ref, *, tp):
    # vmat_ref: VMEM (Hp, H)  f32   (constant block; not re-DMA'd per step)
    # hmat_ref: VMEM (W, Wp)  f32   (constant block)
    # x_ref   : VMEM (tp, H, W)     input planes
    # o_ref   : VMEM (tp, Hp, Wp)   output planes (lane-dense: Wp % 128 == 0)
    vmat = vmat_ref[...]
    hmat = hmat_ref[...]
    for p in range(tp):                       # tp is static (unrolled)
        xp = x_ref[p].astype(jnp.float32)                              # (H, W)
        # Horizontal first so the intermediate is already lane-dense (Wp).
        row = jnp.dot(xp, hmat, preferred_element_type=jnp.float32)    # (H, Wp)
        o_ref[p] = jnp.dot(vmat, row,
                           preferred_element_type=jnp.float32).astype(o_ref.dtype)


# ----------------------------------------------------------------------------
# Tiling: planes per block, derived from actual VMEM footprint
# ----------------------------------------------------------------------------
def _choose_tiling(n_planes, per_plane_bytes, fixed_bytes, budget_bytes,
                   max_unroll=16):
    """Returns (planes_per_block, padded_plane_count)."""
    cap = max(1, (budget_bytes - fixed_bytes) // max(per_plane_bytes, 1))
    cap = int(min(cap, max_unroll, n_planes))
    if n_planes >= 2:
        cap = min(cap, (n_planes + 1) // 2)   # keep >=2 grid steps (pipelining)
    cap = max(cap, 1)

    # Largest divisor of n_planes that fits (no padded planes needed).
    tp = 1
    for d in range(1, cap + 1):
        if n_planes % d == 0:
            tp = d
    # Awkward n_planes (e.g. prime): don't collapse to tiny blocks; pad instead.
    if tp * 2 <= cap:
        tp = cap

    steps = _cdiv(n_planes, tp)
    # v7x shares the 'parallel' grid axis across 2 TensorCores: prefer an even
    # step count when it costs no extra (padded) work.
    if steps > 1 and steps % 2 == 1:
        alt_steps = steps + 1
        alt_tp = _cdiv(n_planes, alt_steps)
        if alt_steps * alt_tp <= steps * tp:
            tp, steps = alt_tp, alt_steps
    return tp, steps * tp


# ----------------------------------------------------------------------------
# Wrapper
# ----------------------------------------------------------------------------
def blur_pallas(img: jnp.ndarray, kx: jnp.ndarray, ky: jnp.ndarray) -> jnp.ndarray:
    """Depthwise separable gaussian blur with reflect padding.

    img: (B, C, H, W). kx: horizontal taps (kernel_size[0],). ky: vertical taps.
    """
    B, C, H, W = img.shape
    kh, kw = int(ky.shape[0]), int(kx.shape[0])
    ph, pw = kh // 2, kw // 2
    if ph >= H or pw >= W:
        # torch's reflect pad raises in this case too.
        raise ValueError("reflect padding requires kernel_size // 2 < spatial size")

    if jnp.issubdtype(img.dtype, jnp.floating):
        out_dtype = img.dtype
    else:
        # TODO(synk): integer/PIL inputs should be rounded & cast back
        #             (torch _cast_squeeze_out); here we just compute in f32.
        img = img.astype(jnp.float32)
        out_dtype = jnp.float32

    N = B * C
    Hp = _round_up(H, 8)          # sublane-aligned output rows
    Wp = _round_up(W, 128)        # lane-dense output stores

    vmat, hmat = _blur_matrices(kx, ky, H, W, Hp, Wp)

    # --- VMEM accounting (actual dtypes, double-buffered blocks) -------------
    in_item = jnp.dtype(img.dtype).itemsize
    out_item = jnp.dtype(out_dtype).itemsize
    per_plane = 2 * H * W * in_item + 2 * Hp * Wp * out_item
    fixed = 2 * (Hp * H + W * Wp) * 4 + 4 * H * Wp * 4   # matrices + f32 intermediates
    try:
        vmem_cap = int(pltpu.get_tpu_info().vmem_capacity_bytes)
    except Exception:
        vmem_cap = 64 * 1024 * 1024          # conservative (v7x-sized) fallback
    budget = vmem_cap // 2                   # leave headroom for compiler scratch

    tp, n_pad = _choose_tiling(N, per_plane, fixed, budget, max_unroll=16)

    footprint = fixed + tp * per_plane
    vmem_limit = min(vmem_cap * 3 // 4, footprint + 8 * 1024 * 1024)
    vmem_limit = int(max(vmem_limit, 16 * 1024 * 1024))

    x = img.reshape(N, H, W)                 # free reshape, no copy
    if n_pad != N:
        x = jnp.concatenate(
            [x, jnp.zeros((n_pad - N, H, W), x.dtype)], axis=0)

    grid = (n_pad // tp,)
    out = pl.pallas_call(
        functools.partial(_blur_kernel, tp=tp),
        out_shape=jax.ShapeDtypeStruct((n_pad, Hp, Wp), out_dtype),
        grid_spec=pltpu.PrefetchScalarGridSpec(
            num_scalar_prefetch=0,
            grid=grid,
            in_specs=[
                pl.BlockSpec((Hp, H), lambda i: (0, 0)),        # vmat (resident)
                pl.BlockSpec((W, Wp), lambda i: (0, 0)),        # hmat (resident)
                pl.BlockSpec((tp, H, W), lambda i: (i, 0, 0)),  # input planes
            ],
            out_specs=pl.BlockSpec((tp, Hp, Wp), lambda i: (i, 0, 0)),
        ),
        compiler_params=pltpu.CompilerParams(
            dimension_semantics=("parallel",),
            vmem_limit_bytes=vmem_limit,
        ),
    )(vmat, hmat, x)

    if (n_pad, Hp, Wp) != (N, H, W):
        out = out[:N, :H, :W]                # crop lane/plane padding
    return out.reshape(B, C, H, W)


# ----------------------------------------------------------------------------
# Module-equivalent wrapper (Blur.forward)
# ----------------------------------------------------------------------------
@functools.partial(jax.jit, static_argnames=("kernel_size", "sigma_range"))
def blur_forward(img: jnp.ndarray, rng_key, kernel_size, sigma_range):
    """Blur.forward: sigma ~ U(sigma_min, sigma_max), build gaussian taps,
    depthwise-conv with reflect padding.  sigma stays on-device (traced)."""
    sigma = jax.random.uniform(rng_key, (), jnp.float32,
                               sigma_range[0], sigma_range[1])
    kx = _gaussian_kernel1d(kernel_size[0], sigma)   # horizontal taps (width)
    ky = _gaussian_kernel1d(kernel_size[1], sigma)   # vertical taps (height)
    out = blur_pallas(img, kx, ky)
    return out, kx, ky


# ----------------------------------------------------------------------------
# Pure-JAX reference (independent code path) for a correctness check
# ----------------------------------------------------------------------------
def _reference_blur(img, kernel2d, kernel_size):
    pw, ph = kernel_size[0] // 2, kernel_size[1] // 2
    xp = jnp.pad(img, ((0, 0), (0, 0), (ph, ph), (pw, pw)), mode="reflect")
    kh, kw = kernel2d.shape
    B, C, H, W = img.shape
    acc = jnp.zeros((B, C, H, W), jnp.float32)
    for dy in range(kh):
        for dx in range(kw):
            acc = acc + kernel2d[dy, dx] * (
                xp[:, :, dy:dy + H, dx:dx + W].astype(jnp.float32))
    return acc.astype(img.dtype)


if __name__ == "__main__":
    key = jax.random.PRNGKey(0)
    k_img, k_sigma = jax.random.split(key)

    B, C, H, W = 2, 4, 16, 16
    kernel_size = (5, 5)          # odd, positive (as Blur.__init__ requires)
    sigma_range = (0.1, 2.0)      # Blur default

    img = jax.random.uniform(k_img, (B, C, H, W), dtype=jnp.float32)

    out, kx, ky = blur_forward(img, k_sigma, kernel_size, sigma_range)
    out = jax.block_until_ready(out)

    kernel2d = ky[:, None] * kx[None, :]          # (kh, kw), matches torchvision
    ref = _reference_blur(img, kernel2d, kernel_size)

    assert out.shape == (B, C, H, W)
    assert out.dtype == jnp.float32
    # Tolerance accounts for the MXU's default f32 matmul precision; any real
    # padding/indexing/normalization bug produces O(1e-2)+ errors.
    err = float(jnp.max(jnp.abs(out.astype(jnp.float32) - ref.astype(jnp.float32))))
    assert err < 5e-3, err

    print("KERNEL_OK")
</pallas_src>

<mosaic_0001>
module attributes {stable_mosaic.version = 11 : i64} {
  func.func @_blur_kernel(%arg0: i32, %arg1: memref<16x16xf32, #tpu.memory_space<vmem>>, %arg2: memref<16x128xf32, #tpu.memory_space<vmem>>, %arg3: memref<4x16x16xf32, #tpu.memory_space<vmem>>, %arg4: memref<4x16x128xf32, #tpu.memory_space<vmem>>) attributes {dimension_semantics = [#tpu.dimension_semantics<parallel>], iteration_bounds = array<i64: 2>, scalar_prefetch = 0 : i64, scratch_operands = 0 : i64, tpu.core_type = #tpu.core_type<tc>, window_params = [{pipeline_mode = #tpu.pipeline_mode<synchronous>, transform_indices = @transform_0, window_bounds = array<i64: 16, 16>}, {pipeline_mode = #tpu.pipeline_mode<synchronous>, transform_indices = @transform_1, window_bounds = array<i64: 16, 128>}, {transform_indices = @transform_2, window_bounds = array<i64: 4, 16, 16>}, {transform_indices = @transform_3, window_bounds = array<i64: 4, 16, 128>}]} {
    %c0 = arith.constant 0 : index
    %c0_0 = arith.constant 0 : index
    %0 = vector.load %arg1[%c0, %c0_0] : memref<16x16xf32, #tpu.memory_space<vmem>>, vector<16x16xf32>
    %c0_1 = arith.constant 0 : index
    %c0_2 = arith.constant 0 : index
    %1 = vector.load %arg2[%c0_1, %c0_2] : memref<16x128xf32, #tpu.memory_space<vmem>>, vector<16x128xf32>
    %c0_3 = arith.constant 0 : index
    %c0_4 = arith.constant 0 : index
    %c0_5 = arith.constant 0 : index
    %2 = vector.load %arg3[%c0_3, %c0_4, %c0_5] : memref<4x16x16xf32, #tpu.memory_space<vmem>>, vector<1x16x16xf32>
    %3 = vector.shape_cast %2 : vector<1x16x16xf32> to vector<16x16xf32>
    %cst = arith.constant dense<0.000000e+00> : vector<16x128xf32>
    %4 = tpu.matmul %3, %1, %cst {dimension_numbers = #tpu.dot_dimension_numbers<[1], [0], [0], [1], [0, 0, 1, 1], [], []>} : vector<16x16xf32>, vector<16x128xf32>, vector<16x128xf32> -> vector<16x128xf32>
    %cst_6 = arith.constant dense<0.000000e+00> : vector<16x128xf32>
    %5 = tpu.matmul %0, %4, %cst_6 {dimension_numbers = #tpu.dot_dimension_numbers<[1], [0], [0], [1], [0, 0, 1, 1], [], []>} : vector<16x16xf32>, vector<16x128xf32>, vector<16x128xf32> -> vector<16x128xf32>
    %c0_7 = arith.constant 0 : index
    %c0_8 = arith.constant 0 : index
    %c0_9 = arith.constant 0 : index
    %6 = vector.load %arg4[%c0_7, %c0_8, %c0_9] : memref<4x16x128xf32, #tpu.memory_space<vmem>>, vector<1x16x128xf32>
    %7 = vector.shape_cast %6 : vector<1x16x128xf32> to vector<16x128xf32>
    %8 = vector.shape_cast %5 : vector<16x128xf32> to vector<1x16x128xf32>
    tpu.vector_store %arg4[%c0_7, %c0_8, %c0_9], %8 {strides = array<i32>} : memref<4x16x128xf32, #tpu.memory_space<vmem>>, vector<1x16x128xf32>,
    %c1 = arith.constant 1 : index
    %c0_10 = arith.constant 0 : index
    %c0_11 = arith.constant 0 : index
    %9 = vector.load %arg3[%c1, %c0_10, %c0_11] : memref<4x16x16xf32, #tpu.memory_space<vmem>>, vector<1x16x16xf32>
    %10 = vector.shape_cast %9 : vector<1x16x16xf32> to vector<16x16xf32>
    %cst_12 = arith.constant dense<0.000000e+00> : vector<16x128xf32>
    %11 = tpu.matmul %10, %1, %cst_12 {dimension_numbers = #tpu.dot_dimension_numbers<[1], [0], [0], [1], [0, 0, 1, 1], [], []>} : vector<16x16xf32>, vector<16x128xf32>, vector<16x128xf32> -> vector<16x128xf32>
    %cst_13 = arith.constant dense<0.000000e+00> : vector<16x128xf32>
    %12 = tpu.matmul %0, %11, %cst_13 {dimension_numbers = #tpu.dot_dimension_numbers<[1], [0], [0], [1], [0, 0, 1, 1], [], []>} : vector<16x16xf32>, vector<16x128xf32>, vector<16x128xf32> -> vector<16x128xf32>
    %c1_14 = arith.constant 1 : index
    %c0_15 = arith.constant 0 : index
    %c0_16 = arith.constant 0 : index
    %13 = vector.load %arg4[%c1_14, %c0_15, %c0_16] : memref<4x16x128xf32, #tpu.memory_space<vmem>>, vector<1x16x128xf32>
    %14 = vector.shape_cast %13 : vector<1x16x128xf32> to vector<16x128xf32>
    %15 = vector.shape_cast %12 : vector<16x128xf32> to vector<1x16x128xf32>
    tpu.vector_store %arg4[%c1_14, %c0_15, %c0_16], %15 {strides = array<i32>} : memref<4x16x128xf32, #tpu.memory_space<vmem>>, vector<1x16x128xf32>,
    %c2 = arith.constant 2 : index
    %c0_17 = arith.constant 0 : index
    %c0_18 = arith.constant 0 : index
    %16 = vector.load %arg3[%c2, %c0_17, %c0_18] : memref<4x16x16xf32, #tpu.memory_space<vmem>>, vector<1x16x16xf32>
    %17 = vector.shape_cast %16 : vector<1x16x16xf32> to vector<16x16xf32>
    %cst_19 = arith.constant dense<0.000000e+00> : vector<16x128xf32>
    %18 = tpu.matmul %17, %1, %cst_19 {dimension_numbers = #tpu.dot_dimension_numbers<[1], [0], [0], [1], [0, 0, 1, 1], [], []>} : vector<16x16xf32>, vector<16x128xf32>, vector<16x128xf32> -> vector<16x128xf32>
    %cst_20 = arith.constant dense<0.000000e+00> : vector<16x128xf32>
    %19 = tpu.matmul %0, %18, %cst_20 {dimension_numbers = #tpu.dot_dimension_numbers<[1], [0], [0], [1], [0, 0, 1, 1], [], []>} : vector<16x16xf32>, vector<16x128xf32>, vector<16x128xf32> -> vector<16x128xf32>
    %c2_21 = arith.constant 2 : index
    %c0_22 = arith.constant 0 : index
    %c0_23 = arith.constant 0 : index
    %20 = vector.load %arg4[%c2_21, %c0_22, %c0_23] : memref<4x16x128xf32, #tpu.memory_space<vmem>>, vector<1x16x128xf32>
    %21 = vector.shape_cast %20 : vector<1x16x128xf32> to vector<16x128xf32>
    %22 = vector.shape_cast %19 : vector<16x128xf32> to vector<1x16x128xf32>
    tpu.vector_store %arg4[%c2_21, %c0_22, %c0_23], %22 {strides = array<i32>} : memref<4x16x128xf32, #tpu.memory_space<vmem>>, vector<1x16x128xf32>,
    %c3 = arith.constant 3 : index
    %c0_24 = arith.constant 0 : index
    %c0_25 = arith.constant 0 : index
    %23 = vector.load %arg3[%c3, %c0_24, %c0_25] : memref<4x16x16xf32, #tpu.memory_space<vmem>>, vector<1x16x16xf32>
    %24 = vector.shape_cast %23 : vector<1x16x16xf32> to vector<16x16xf32>
    %cst_26 = arith.constant dense<0.000000e+00> : vector<16x128xf32>
    %25 = tpu.matmul %24, %1, %cst_26 {dimension_numbers = #tpu.dot_dimension_numbers<[1], [0], [0], [1], [0, 0, 1, 1], [], []>} : vector<16x16xf32>, vector<16x128xf32>, vector<16x128xf32> -> vector<16x128xf32>
    %cst_27 = arith.constant dense<0.000000e+00> : vector<16x128xf32>
    %26 = tpu.matmul %0, %25, %cst_27 {dimension_numbers = #tpu.dot_dimension_numbers<[1], [0], [0], [1], [0, 0, 1, 1], [], []>} : vector<16x16xf32>, vector<16x128xf32>, vector<16x128xf32> -> vector<16x128xf32>
    %c3_28 = arith.constant 3 : index
    %c0_29 = arith.constant 0 : index
    %c0_30 = arith.constant 0 : index
    %27 = vector.load %arg4[%c3_28, %c0_29, %c0_30] : memref<4x16x128xf32, #tpu.memory_space<vmem>>, vector<1x16x128xf32>
    %28 = vector.shape_cast %27 : vector<1x16x128xf32> to vector<16x128xf32>
    %29 = vector.shape_cast %26 : vector<16x128xf32> to vector<1x16x128xf32>
    tpu.vector_store %arg4[%c3_28, %c0_29, %c0_30], %29 {strides = array<i32>} : memref<4x16x128xf32, #tpu.memory_space<vmem>>, vector<1x16x128xf32>,
    return
  }
  func.func @transform_0(%arg0: i32) -> (i32, i32) {
    %c0_i32 = arith.constant 0 : i32
    %c0_i32_0 = arith.constant 0 : i32
    %c0_i32_1 = arith.constant 0 : i32
    return %c0_i32, %c0_i32_0 : i32, i32
  }
  func.func @transform_1(%arg0: i32) -> (i32, i32) {
    %c0_i32 = arith.constant 0 : i32
    %c0_i32_0 = arith.constant 0 : i32
    %c0_i32_1 = arith.constant 0 : i32
    return %c0_i32, %c0_i32_0 : i32, i32
  }
  func.func @transform_2(%arg0: i32) -> (i32, i32, i32) {
    %c0_i32 = arith.constant 0 : i32
    %c0_i32_0 = arith.constant 0 : i32
    %c0_i32_1 = arith.constant 0 : i32
    return %arg0, %c0_i32, %c0_i32_0 : i32, i32, i32
  }
  func.func @transform_3(%arg0: i32) -> (i32, i32, i32) {
    %c0_i32 = arith.constant 0 : i32
    %c0_i32_0 = arith.constant 0 : i32
    %c0_i32_1 = arith.constant 0 : i32
    return %arg0, %c0_i32, %c0_i32_0 : i32, i32, i32
  }
}

</mosaic_0001>

<bundles_post_ra>
// kernel: blur_forward.1
= control target key start
LH: loop header
LB: loop body
LE: loop exit
PB: predicated region body
PF: predicated region fallthrough
CT: control target
= control target key end

     0   :  { %8 = vsyncpa [#allocation3], 0  ;;  %s1332_s0 = inlined_call_operand.vmem [shape: f32[16,16], index: 0, kind: input, shape index: {}]   ;;  %s1333_s1 = inlined_call_operand.vmem [shape: f32[16,128], index: 1, kind: input, shape index: {}]   ;;  %s1334_s2 = inlined_call_operand.vmem [shape: f32[8,16,16], index: 2, kind: input, shape index: {}]   ;;  %s1335_s3 = inlined_call_operand.hbm [shape: f32[8,16,128], index: 3, kind: output, shape index: {}]  }
   0x1   :  { %10 = vsyncpa [#allocation3 + $0x1], 0  ;;  %s1202_s12 = smov 0   ;;  %s1204_s13 = smov 0  }
   0x2   :  { %s1206_s14 = smov 0   ;;  %s1208_s15 = smov 0  }
   0x3 LB: > { %s1223_s16 = sadd.s32 4294967295, %s1177_s15   ;;  %s909_s17 = sadd.s32 4294967294, %s1177_s15   ;;  %s1177_s15 = sphi %s1208_s15, %s1341_s15   ;;  %s1173_s14 = sphi %s1206_s14, %s1340_s14   ;;  %s1169_s13 = sphi %s1204_s13, %s1339_s13   ;;  %s1165_s12 = sphi %s1202_s12, %s1338_s12  }
   0x4   : > { %s1227_s18 = sadd.s32 1, %s1177_s15   ;;  %s91_s19 = sadd.s32 1, %s1173_s14 }
   0x5   : > { %s88_s20 = ssub.s32 %s1177_s15, %s1227_s18  ;;  %p101_p0 = scmp.ne.s32.totalorder %s1173_s14, %s1169_s13 }
   0x6   : > { %p89_p1 = scmp.eq.s32.totalorder %s88_s20, 0  ;;  %p102_p2 = scmp.eq.s32.totalorder %s1223_s16, 1 }
   0x7   : > { %p107_p3 = scmp.ne.s32.totalorder %s1169_s13, %s1165_s12  ;;  %p108_p4 = scmp.eq.s32.totalorder %s909_s17, 1 }
   0x8   : > { %s1238_s21 = scalar_select %p89_p1, %s1173_s14, %s91_s19  }
   0x9   : > { %p1240_p5 = por %p102_p2, %p101_p0  ;;  %p1244_p6 = por %p108_p4, %p107_p3 }
   0xa   : > { %p912_p7 = scmp.ge.s32.totalorder %s1177_s15, 1  ;;  %p142_p8 = scmp.lt.s32.totalorder %s1177_s15, 3 }
   0xc   : > { %p143_p9 = pnand %p912_p7, %p142_p8 }
   0xd   : > { %v177_v0 = vld [vmem:[%s1333_s1] sm:$0xff] (!%p143_p9)  ;;  %v178_v1 = vld [vmem:[%s1333_s1 + $0x8] sm:$0xff] (!%p143_p9)  ;;  %s914_s28 = sshll.u32 (!%p143_p9), %s1223_s16, 2  ;;  %vm181_vm0 = vcmask (!%p143_p9), 130048   ;;  %s164_s10 = sand.u32 (!%p143_p9), 1, %s1169_s13  }
   0xe   : > { %146 = sbr.rel (%p143_p9) target bundleno = 485 (0x1e5), region = 32  ;;  %v1042_v2 = vpack.c.bf16 (!%p143_p9), %v178_v1, %v177_v0  ;;  %p168_p10 = scmp.lt.s32.totalorder (!%p143_p9), %s914_s28, 7  ;;  %v175_v11 = vld [vmem:[%s1332_s0] sm:$0xff] (!%p143_p9)  ;;  %v176_v17 = vld [vmem:[%s1332_s0 + $0x8] sm:$0xff] (!%p143_p9) }
   0xf   : > { %997 = vmatprep.mubr.msk.f32.mxu1 (!%p143_p9), %vm181_vm0, %v175_v11  ;;  %s913_s11 = sshll.u32 (!%p143_p9), %s164_s10, 6  ;;  %s953_s20 = sshll.u32 (!%p143_p9), %s1223_s16, 10 }
  0x10   : > { %1043 = vmatprep.subr.bf16.mxu0 (!%p143_p9), %v1042_v2  ;;  %s166_s17 = scalar_lea.vmem (!%p143_p9), [#allocation2], %s913_s11  ;;  %s1289_s26 = scalar_lea.hbm (!%p143_p9), %s1335_s3, %s953_s20 }
  0x11   : > { %1045 = vmatpush3.bf16.msra.mxu0 (!%p143_p9), %v1042_v2  ;;  %s847_s19 = sshll.u32 (!%p143_p9), %s166_s17, 4  ;;  %s1291_s27 = scalar_lea.sflag (!%p143_p9), [#allocation3], %s164_s10  ;;  %s1284_s19 = int_to_ptr.vmem [resolvable:$true] %s847_s19 }
  0x12   : > { %1051 = vmatprep.subr.bf16.mxu0 (!%p143_p9), %v1042_v2  ;;  %s1115_s16 = scalar_lea.vmem (!%p143_p9), %s1284_s19, 1024 }
  0x13   : > { %p1116_p11 = scmp.ne.s32.totalorder (!%p143_p9), %s1284_s19, %s1115_s16 }
  0x15   : > { %s1343_s28 = smov (!%p168_p10, %s914_s28), 7  ;;  %p1117_p12 = pnand %p1116_p11, %p1240_p5 }
  0x16   : > { %s951_s29 = sshll.u32 %s1343_s28, 4  ;;  %s1179_s28 = smov [#allocation2]  }
  0x17   : > { %s172_s5 = scalar_lea.vmem %s1334_s2, %s951_s29  ;;  %p1118_p13 = pneg %p1117_p12 }
  0x18   : > { %v179_v3 = vld [vmem:[%s172_s5] sm:$0xff]  ;;  %v180_v4 = vld [vmem:[%s172_s5 + $0x8] sm:$0xff]  ;;  %v921_v5 = vld [vmem:[%s172_s5 + $0x10] sm:$0xff]  ;;  %s1119_s29 = sshll.u32 %s1179_s28, 4  ;;  %s1120_s29 = int_to_ptr.vmem [resolvable:$false] %s1119_s29 }
  0x19   : > { %990 = vmatprep.mubr.msk.f32.mxu0 %vm181_vm0, %v179_v3  ;;  %v922_v6 = vld [vmem:[%s172_s5 + $0x18] sm:$0xff]  ;;  %v929_v7 = vld [vmem:[%s172_s5 + $0x20] sm:$0xff]  ;;  %v930_v8 = vld [vmem:[%s172_s5 + $0x28] sm:$0xff]  ;;  %s1121_s30 = scalar_lea.vmem %s1120_s29, 2048  ;;  %p1122_p0 = scmp.lt.s32.totalorder %s1284_s19, %s1120_s29 }
  0x1a   : > { %991 = vmatmul.mubr.msk.f32.vlgmr.msra.gmra.mrb[0].mxu0 %vm181_vm0, %v180_v4  ;;  %v937_v9 = vld [vmem:[%s172_s5 + $0x30] sm:$0xff]  ;;  %v938_v10 = vld [vmem:[%s172_s5 + $0x38] sm:$0xff]  ;;  %p1123_p1 = scmp.lt.s32.totalorder %s1121_s30, %s1115_s16 }
  0x1b   : > { %1053 = vmatpush3.bf16.msra.mxu0 %v1042_v2  ;;  %1004 = vmatprep.mubr.msk.f32.mxu0 %vm181_vm0, %v921_v5 }
  0x1c   : > { %1059 = vmatprep.subr.bf16.mxu0 %v1042_v2  ;;  %p1124_p2 = por %p1123_p1, %p1122_p0 }
  0x1e   : > { %1005 = vmatmul.mubr.msk.f32.vlgmr.msra.gmra.mrb[2].mxu0 %vm181_vm0, %v922_v6  ;;  %p1125_p3 = pnand %p1124_p2, %p1118_p13 }
  0x1f   : > { %1061 = vmatpush3.bf16.msra.mxu0 %v1042_v2  ;;  %1018 = vmatprep.mubr.msk.f32.mxu0 %vm181_vm0, %v929_v7 }
  0x20   : > { %1067 = vmatprep.subr.bf16.mxu0 %v1042_v2 }
  0x22   : > { %1019 = vmatmul.mubr.msk.f32.vlgmr.msra.gmra.mrb[4].mxu0 %vm181_vm0, %v930_v8 }
  0x23   : > { %1069 = vmatpush3.bf16.msra.mxu0 %v1042_v2  ;;  %1032 = vmatprep.mubr.msk.f32.mxu0 %vm181_vm0, %v937_v9 }
  0x26   : > { %1033 = vmatmul.mubr.msk.f32.vlgmr.msra.gmra.mrb[6].mxu0 %vm181_vm0, %v938_v10 }
  0xed   : > { %v992_v12 = vpop.f32.mrb[0].mxu0 }
  0xee   : > { %v254_v13 = vpop.f32.mrb[1].mxu0 }
  0xef   : > { %v1046_v14 = vpack.c.bf16 %v992_v12, %v254_v13 }
  0xf1   : > { %1047 = vmatprep.subr.bf16.mxu1 %v1046_v14  ;;  %v1006_v15 = vpop.f32.mrb[2].mxu0 }
  0xf2   : > { %1049 = vmatpush3.bf16.msra.mxu1 %v1046_v14  ;;  %v421_v16 = vpop.f32.mrb[3].mxu0 }
  0xf3   : > { %v1054_v18 = vpack.c.bf16 %v1006_v15, %v421_v16 }
  0xf5   : > { %998 = vmatmul.mubr.msk.f32.vlgmr.msra.gmra.mrb[0].mxu1 %vm181_vm0, %v176_v17  ;;  %1055 = vmatprep.subr.bf16.mxu1 %v1054_v18  ;;  %v1020_v19 = vpop.f32.mrb[4].mxu0 }
  0xf6   : > { %1057 = vmatpush3.bf16.msra.mxu1 %v1054_v18  ;;  %v583_v20 = vpop.f32.mrb[5].mxu0  ;;  %1011 = vmatprep.mubr.msk.f32.mxu1 %vm181_vm0, %v175_v11 }
  0xf7   : > { %v1062_v21 = vpack.c.bf16 %v1020_v19, %v583_v20 }
  0xf9   : > { %1012 = vmatmul.mubr.msk.f32.vlgmr.msra.gmra.mrb[2].mxu1 %vm181_vm0, %v176_v17  ;;  %1063 = vmatprep.subr.bf16.mxu1 %v1062_v21  ;;  %v1034_v22 = vpop.f32.mrb[6].mxu0 }
  0xfa   : > { %1065 = vmatpush3.bf16.msra.mxu1 %v1062_v21  ;;  %v745_v23 = vpop.f32.mrb[7].mxu0  ;;  %1025 = vmatprep.mubr.msk.f32.mxu1 %vm181_vm0, %v175_v11 }
  0xfb   : > { %v1070_v24 = vpack.c.bf16 %v1034_v22, %v745_v23 }
  0xfd   : > { %1026 = vmatmul.mubr.msk.f32.vlgmr.msra.gmra.mrb[4].mxu1 %vm181_vm0, %v176_v17  ;;  %1071 = vmatprep.subr.bf16.mxu1 %v1070_v24 }
  0xfe   : > { %1073 = vmatpush3.bf16.msra.mxu1 %v1070_v24  ;;  %1039 = vmatprep.mubr.msk.f32.mxu1 %vm181_vm0, %v175_v11 }
 0x101   : > { %1040 = vmatmul.mubr.msk.f32.vlgmr.msra.gmra.mrb[6].mxu1 %vm181_vm0, %v176_v17 }
 0x1c8   : > { %v999_v25 = vpop.f32.mrb[0].mxu1 }
 0x1c9   : > { %345 = vst [vmem:[%s166_s17 + $0x8] sm:$0xff] %v999_v25  ;;  %v335_v26 = vpop.f32.mrb[1].mxu1 }
 0x1ca   : > { %344 = vst [vmem:[%s166_s17] sm:$0xff] %v335_v26 }
 0x1cc   : > { %v1013_v27 = vpop.f32.mrb[2].mxu1 }
 0x1cd   : > { %928 = vst [vmem:[%s166_s17 + $0x18] sm:$0xff] %v1013_v27  ;;  %v496_v28 = vpop.f32.mrb[3].mxu1 }
 0x1ce   : > { %927 = vst [vmem:[%s166_s17 + $0x10] sm:$0xff] %v496_v28 }
 0x1d0   : > { %v1027_v29 = vpop.f32.mrb[4].mxu1 }
 0x1d1   : > { %936 = vst [vmem:[%s166_s17 + $0x28] sm:$0xff] %v1027_v29  ;;  %v658_v30 = vpop.f32.mrb[5].mxu1 }
 0x1d2   : > { %935 = vst [vmem:[%s166_s17 + $0x20] sm:$0xff] %v658_v30 }
 0x1d4   : > { %v1041_v31 = vpop.f32.mrb[6].mxu1 }
 0x1d5   : > { %944 = vst [vmem:[%s166_s17 + $0x38] sm:$0xff] %v1041_v31  ;;  %v820_v32 = vpop.f32.mrb[7].mxu1 }
 0x1d6   : > { %943 = vst [vmem:[%s166_s17 + $0x30] sm:$0xff] %v820_v32 }
 0x1d7   : > { %1128 = shalt.err (!%p1125_p3)
}
 0x1d8   : > { %s1129_s4 = scalar_lea.hbm %s1289_s26, 1024  ;;  %s1133_s7 = scalar_lea.hbm %s1335_s3, 2048 }
 0x1d9   : > { %p1130_p4 = scmp.ne.s32.totalorder %s1289_s26, %s1129_s4  ;;  %p1134_p9 = scmp.lt.u32.totalorder %s1289_s26, %s1335_s3 }
 0x1da   : > { %p1135_p10 = scmp.lt.u32.totalorder %s1133_s7, %s1129_s4  ;;  %p1137_p12 = scmp.lt.u32.totalorder %s1129_s4, %s1289_s26 }
 0x1db   : > { %p1131_p7 = pnand %p1130_p4, %p1240_p5 }
 0x1dc   : > { %p1136_p11 = por %p1135_p10, %p1134_p9 }
 0x1dd   : > { %p1132_p8 = pneg %p1131_p7 }
 0x1de   : > { %p1138_p13 = por %p1137_p12, %p1136_p11 }
 0x1e0   : > { %p1139_p0 = pnand %p1138_p13, %p1132_p8 }
 0x1e2   : > { %1142 = shalt.err (!%p1139_p0)
}
 0x1e3   : > { %s1180_s10 = smov 128   ;;  %s1181_s11 = smov 8  }
 0x1e4   : > { %1074 = dma.vmem_to_hbm [thread:$0]  (%p1240_p5), %s1284_s19, 1024, %s1289_s26, %s1291_s27, %s1180_s10, %s1180_s10, %s1181_s11  }
 0x1e5 PF: > { %p1080_p1 = scmp.ge.s32.totalorder %s1177_s15, 2  ;;  %s862_s17 = sand.u32 1, %s1165_s12  }
 0x1e6   : > { %s863_s20 = scalar_lea.sflag [#allocation3], %s862_s17 }
 0x1e7   : > { %p1077_p2 = pnand %p1080_p1, %p1244_p6 }
 0x1e9   : > { %1160 = dma.done.wait (!%p1077_p2), %s863_s20, 1024  }
 0x1ea   : > { %1162 = vsyncadd (!%p1077_p2), %s863_s20, 4294966272  ;;  %p13_p3 = scmp.ge.s32.totalorder %s1227_s18, 4   ;;  %s1338_s12 = smov %s1169_s13 }
 0x1eb   : > { %s1339_s13 = smov %s1173_s14  ;;  %s1340_s14 = smov %s1238_s21 }
 0x1ec   : > { %s1341_s15 = smov %s1227_s18  ;;  %15 = sbr.rel (!%p13_p3) target bundleno = 3 (0x3), region = 73 }
 0x1f3   :  { %868 = vsyncpa [#allocation3], 1 }
 0x1f4   :  { %870 = vsyncpa [#allocation3 + $0x1], 1 }

</bundles_post_ra>
